<compile_context>
chip_gen: v6e
topology: v6e:2x2x1
jax: 0.10.0
libtpu: 0.0.40
codegen_flags: <defaults>
</compile_context>

<pallas_src>
import jax
import jax.numpy as jnp
from jax.experimental import pallas as pl
from jax.experimental.pallas import tpu as pltpu

HIDDEN = 64   # logical hidden size of the PyTorch module


def _round_up(n, m):
    return (n + m - 1) // m * m


def mlp_kernel(x_ref,
               w1_ref, b1_ref,
               w2_ref, b2_ref,
               w3_ref, b3_ref,
               w4_ref, b4_ref,
               o_ref):
    # Fused 4-layer MLP on one batch tile.  All matmuls accumulate in f32 on
    # the MXU; bias-add + ReLU run on the VPU.  Everything is resident in
    # VMEM/vregs between layers — only x and the final output touch HBM.
    def layer(h, w_ref, b_ref, relu):
        acc = jnp.dot(h, w_ref[...], preferred_element_type=jnp.float32)
        acc = acc + b_ref[...]          # (1, N) broadcasts over the batch tile
        if relu:
            acc = jnp.maximum(acc, 0.0)
        return acc

    h = layer(x_ref[...], w1_ref, b1_ref, relu=True)
    h = layer(h, w2_ref, b2_ref, relu=True)
    h = layer(h, w3_ref, b3_ref, relu=True)
    o_ref[...] = layer(h, w4_ref, b4_ref, relu=False).astype(o_ref.dtype)


def dynamic_nn_forward(x, params, *, batch_tile=1024):
    """x: [B, in_size] float32.
    params: dict of w1..w4 ([in_feat, out_feat]) and b1..b4 ([1, out_feat]), f32.

    batch_tile: upper bound on rows per grid step.  The actual tile is capped
    so the grid has >= ~8 steps (>= 4 per TensorCore on v7x) for pipelining,
    and rounded to a multiple of 8 (sublane).  Even at 1024 rows the
    double-buffered x/out tiles are a few hundred KiB — far under VMEM limits
    on every generation (v7x: 64 MiB).
    """
    B, in_size = x.shape
    hidden = params["w1"].shape[1]
    out_size = params["w4"].shape[1]

    # --- batch tiling: no zero-padded batch copy; Pallas masks a ragged last
    # block.  Keep >= ~8 grid steps when B is large enough. ---
    tb = min(int(batch_tile), _round_up(pl.cdiv(B, 8), 8))
    tb = max(_round_up(tb, 8), 8)
    grid = (pl.cdiv(B, tb),)

    def rep(shape):
        # Weights/biases: constant block index -> DMA'd into VMEM once and
        # reused across every grid step.
        return pl.BlockSpec(shape, lambda i: (0, 0))

    # TODO(synk): if fidelity to bit-exact PyTorch f32 matmuls is required,
    # pass precision=jax.lax.Precision.HIGHEST to the in-kernel dots.

    # Cost estimate from the true (unpadded) traffic: x + out + weights/biases.
    flops = 2 * B * (in_size * hidden + 2 * hidden * hidden + hidden * out_size)
    bytes_accessed = 4 * (
        B * in_size + B * out_size
        + in_size * hidden + 2 * hidden * hidden + hidden * out_size   # weights
        + 3 * hidden + out_size                                        # biases
    )

    out = pl.pallas_call(
        mlp_kernel,
        out_shape=jax.ShapeDtypeStruct((B, out_size), x.dtype),
        grid_spec=pltpu.PrefetchScalarGridSpec(
            num_scalar_prefetch=0,
            grid=grid,
            in_specs=[
                pl.BlockSpec((tb, in_size), lambda i: (i, 0)),   # x tile over batch
                rep((in_size, hidden)), rep((1, hidden)),        # fc1
                rep((hidden, hidden)), rep((1, hidden)),         # fc2
                rep((hidden, hidden)), rep((1, hidden)),         # fc3
                rep((hidden, out_size)), rep((1, out_size)),     # fc4
            ],
            out_specs=pl.BlockSpec((tb, out_size), lambda i: (i, 0)),
        ),
        compiler_params=pltpu.CompilerParams(
            dimension_semantics=("parallel",)),
        cost_estimate=pl.CostEstimate(
            flops=flops, transcendentals=0, bytes_accessed=bytes_accessed),
    )(x,
      params["w1"], params["b1"],
      params["w2"], params["b2"],
      params["w3"], params["b3"],
      params["w4"], params["b4"])

    return out


def init_params(key, in_size, out_size, hidden=HIDDEN, dtype=jnp.float32):
    """Deterministic synthetic init (PyTorch-Linear-style uniform bounds)."""
    keys = jax.random.split(key, 8)

    def linear(kw, kb, fan_in, fan_out):
        bound = 1.0 / jnp.sqrt(fan_in)
        w = jax.random.uniform(kw, (fan_in, fan_out), dtype, -bound, bound)
        b = jax.random.uniform(kb, (1, fan_out), dtype, -bound, bound)
        return w, b

    w1, b1 = linear(keys[0], keys[1], in_size, hidden)
    w2, b2 = linear(keys[2], keys[3], hidden, hidden)
    w3, b3 = linear(keys[4], keys[5], hidden, hidden)
    w4, b4 = linear(keys[6], keys[7], hidden, out_size)
    return {"w1": w1, "b1": b1, "w2": w2, "b2": b2,
            "w3": w3, "b3": b3, "w4": w4, "b4": b4}


def reference_forward(x, p):
    """Pure-JAX f32 reference matching the PyTorch module."""
    def layer(h, w, b, relu=True):
        y = jnp.dot(h, w, preferred_element_type=jnp.float32) + b
        return jnp.maximum(y, 0.0) if relu else y

    h = layer(x, p["w1"], p["b1"])
    h = layer(h, p["w2"], p["b2"])
    h = layer(h, p["w3"], p["b3"])
    return layer(h, p["w4"], p["b4"], relu=False)


if __name__ == "__main__":
    key = jax.random.PRNGKey(0)
    k_x, k_p = jax.random.split(key)

    B, in_size, out_size = 512, 32, 16
    x = jax.random.normal(k_x, (B, in_size), jnp.float32)
    params = init_params(k_p, in_size, out_size)

    out = dynamic_nn_forward(x, params)       # tb=64 -> grid=(8,)
    out = jax.block_until_ready(out)

    ref = reference_forward(x, params)
    assert out.shape == (B, out_size)
    # Tolerance covers MXU f32-matmul pass differences vs. the XLA reference.
    assert jnp.allclose(out, ref, atol=2e-2, rtol=2e-2)

    print("KERNEL_OK")
</pallas_src>

<mosaic_0001>
module attributes {stable_mosaic.version = 11 : i64} {
  func.func @mlp_kernel(%arg0: i32, %arg1: memref<64x32xf32, #tpu.memory_space<vmem>>, %arg2: memref<32x64xf32, #tpu.memory_space<vmem>>, %arg3: memref<1x64xf32, #tpu.memory_space<vmem>>, %arg4: memref<64x64xf32, #tpu.memory_space<vmem>>, %arg5: memref<1x64xf32, #tpu.memory_space<vmem>>, %arg6: memref<64x64xf32, #tpu.memory_space<vmem>>, %arg7: memref<1x64xf32, #tpu.memory_space<vmem>>, %arg8: memref<64x16xf32, #tpu.memory_space<vmem>>, %arg9: memref<1x16xf32, #tpu.memory_space<vmem>>, %arg10: memref<64x16xf32, #tpu.memory_space<vmem>>) attributes {dimension_semantics = [#tpu.dimension_semantics<parallel>], iteration_bounds = array<i64: 8>, scalar_prefetch = 0 : i64, scratch_operands = 0 : i64, tpu.core_type = #tpu.core_type<tc>, window_params = [{transform_indices = @transform_0, window_bounds = array<i64: 64, 32>}, {pipeline_mode = #tpu.pipeline_mode<synchronous>, transform_indices = @transform_1, window_bounds = array<i64: 32, 64>}, {pipeline_mode = #tpu.pipeline_mode<synchronous>, transform_indices = @transform_2, window_bounds = array<i64: 1, 64>}, {pipeline_mode = #tpu.pipeline_mode<synchronous>, transform_indices = @transform_3, window_bounds = array<i64: 64, 64>}, {pipeline_mode = #tpu.pipeline_mode<synchronous>, transform_indices = @transform_4, window_bounds = array<i64: 1, 64>}, {pipeline_mode = #tpu.pipeline_mode<synchronous>, transform_indices = @transform_5, window_bounds = array<i64: 64, 64>}, {pipeline_mode = #tpu.pipeline_mode<synchronous>, transform_indices = @transform_6, window_bounds = array<i64: 1, 64>}, {pipeline_mode = #tpu.pipeline_mode<synchronous>, transform_indices = @transform_7, window_bounds = array<i64: 64, 16>}, {pipeline_mode = #tpu.pipeline_mode<synchronous>, transform_indices = @transform_8, window_bounds = array<i64: 1, 16>}, {transform_indices = @transform_9, window_bounds = array<i64: 64, 16>}]} {
    %c0 = arith.constant 0 : index
    %c0_0 = arith.constant 0 : index
    %0 = vector.load %arg1[%c0, %c0_0] : memref<64x32xf32, #tpu.memory_space<vmem>>, vector<64x32xf32>
    %c0_1 = arith.constant 0 : index
    %c0_2 = arith.constant 0 : index
    %1 = vector.load %arg2[%c0_1, %c0_2] : memref<32x64xf32, #tpu.memory_space<vmem>>, vector<32x64xf32>
    %cst = arith.constant dense<0.000000e+00> : vector<64x64xf32>
    %2 = tpu.matmul %0, %1, %cst {dimension_numbers = #tpu.dot_dimension_numbers<[1], [0], [0], [1], [0, 0, 1, 1], [], []>} : vector<64x32xf32>, vector<32x64xf32>, vector<64x64xf32> -> vector<64x64xf32>
    %c0_3 = arith.constant 0 : index
    %c0_4 = arith.constant 0 : index
    %3 = vector.load %arg3[%c0_3, %c0_4] : memref<1x64xf32, #tpu.memory_space<vmem>>, vector<1x64xf32>
    %4 = vector.broadcast %3 : vector<1x64xf32> to vector<64x64xf32>
    %5 = arith.addf %2, %4 : vector<64x64xf32>
    %cst_5 = arith.constant 0.000000e+00 : f32
    %6 = vector.broadcast %cst_5 : f32 to vector<64x64xf32>
    %7 = arith.maximumf %5, %6 : vector<64x64xf32>
    %c0_6 = arith.constant 0 : index
    %c0_7 = arith.constant 0 : index
    %8 = vector.load %arg4[%c0_6, %c0_7] : memref<64x64xf32, #tpu.memory_space<vmem>>, vector<64x64xf32>
    %cst_8 = arith.constant dense<0.000000e+00> : vector<64x64xf32>
    %9 = tpu.matmul %7, %8, %cst_8 {dimension_numbers = #tpu.dot_dimension_numbers<[1], [0], [0], [1], [0, 0, 1, 1], [], []>} : vector<64x64xf32>, vector<64x64xf32>, vector<64x64xf32> -> vector<64x64xf32>
    %c0_9 = arith.constant 0 : index
    %c0_10 = arith.constant 0 : index
    %10 = vector.load %arg5[%c0_9, %c0_10] : memref<1x64xf32, #tpu.memory_space<vmem>>, vector<1x64xf32>
    %11 = vector.broadcast %10 : vector<1x64xf32> to vector<64x64xf32>
    %12 = arith.addf %9, %11 : vector<64x64xf32>
    %cst_11 = arith.constant 0.000000e+00 : f32
    %13 = vector.broadcast %cst_11 : f32 to vector<64x64xf32>
    %14 = arith.maximumf %12, %13 : vector<64x64xf32>
    %c0_12 = arith.constant 0 : index
    %c0_13 = arith.constant 0 : index
    %15 = vector.load %arg6[%c0_12, %c0_13] : memref<64x64xf32, #tpu.memory_space<vmem>>, vector<64x64xf32>
    %cst_14 = arith.constant dense<0.000000e+00> : vector<64x64xf32>
    %16 = tpu.matmul %14, %15, %cst_14 {dimension_numbers = #tpu.dot_dimension_numbers<[1], [0], [0], [1], [0, 0, 1, 1], [], []>} : vector<64x64xf32>, vector<64x64xf32>, vector<64x64xf32> -> vector<64x64xf32>
    %c0_15 = arith.constant 0 : index
    %c0_16 = arith.constant 0 : index
    %17 = vector.load %arg7[%c0_15, %c0_16] : memref<1x64xf32, #tpu.memory_space<vmem>>, vector<1x64xf32>
    %18 = vector.broadcast %17 : vector<1x64xf32> to vector<64x64xf32>
    %19 = arith.addf %16, %18 : vector<64x64xf32>
    %cst_17 = arith.constant 0.000000e+00 : f32
    %20 = vector.broadcast %cst_17 : f32 to vector<64x64xf32>
    %21 = arith.maximumf %19, %20 : vector<64x64xf32>
    %c0_18 = arith.constant 0 : index
    %c0_19 = arith.constant 0 : index
    %22 = vector.load %arg8[%c0_18, %c0_19] : memref<64x16xf32, #tpu.memory_space<vmem>>, vector<64x16xf32>
    %cst_20 = arith.constant dense<0.000000e+00> : vector<64x16xf32>
    %23 = tpu.matmul %21, %22, %cst_20 {dimension_numbers = #tpu.dot_dimension_numbers<[1], [0], [0], [1], [0, 0, 1, 1], [], []>} : vector<64x64xf32>, vector<64x16xf32>, vector<64x16xf32> -> vector<64x16xf32>
    %c0_21 = arith.constant 0 : index
    %c0_22 = arith.constant 0 : index
    %24 = vector.load %arg9[%c0_21, %c0_22] : memref<1x16xf32, #tpu.memory_space<vmem>>, vector<1x16xf32>
    %25 = vector.broadcast %24 : vector<1x16xf32> to vector<64x16xf32>
    %26 = arith.addf %23, %25 : vector<64x16xf32>
    %c0_23 = arith.constant 0 : index
    %c0_24 = arith.constant 0 : index
    %27 = vector.load %arg10[%c0_23, %c0_24] : memref<64x16xf32, #tpu.memory_space<vmem>>, vector<64x16xf32>
    tpu.vector_store %arg10[%c0_23, %c0_24], %26 {strides = array<i32>} : memref<64x16xf32, #tpu.memory_space<vmem>>, vector<64x16xf32>,
    return
  }
  func.func @transform_0(%arg0: i32) -> (i32, i32) {
    %c0_i32 = arith.constant 0 : i32
    %c0_i32_0 = arith.constant 0 : i32
    return %arg0, %c0_i32 : i32, i32
  }
  func.func @transform_1(%arg0: i32) -> (i32, i32) {
    %c0_i32 = arith.constant 0 : i32
    %c0_i32_0 = arith.constant 0 : i32
    %c0_i32_1 = arith.constant 0 : i32
    return %c0_i32, %c0_i32_0 : i32, i32
  }
  func.func @transform_2(%arg0: i32) -> (i32, i32) {
    %c0_i32 = arith.constant 0 : i32
    %c0_i32_0 = arith.constant 0 : i32
    %c0_i32_1 = arith.constant 0 : i32
    return %c0_i32, %c0_i32_0 : i32, i32
  }
  func.func @transform_3(%arg0: i32) -> (i32, i32) {
    %c0_i32 = arith.constant 0 : i32
    %c0_i32_0 = arith.constant 0 : i32
    %c0_i32_1 = arith.constant 0 : i32
    return %c0_i32, %c0_i32_0 : i32, i32
  }
  func.func @transform_4(%arg0: i32) -> (i32, i32) {
    %c0_i32 = arith.constant 0 : i32
    %c0_i32_0 = arith.constant 0 : i32
    %c0_i32_1 = arith.constant 0 : i32
    return %c0_i32, %c0_i32_0 : i32, i32
  }
  func.func @transform_5(%arg0: i32) -> (i32, i32) {
    %c0_i32 = arith.constant 0 : i32
    %c0_i32_0 = arith.constant 0 : i32
    %c0_i32_1 = arith.constant 0 : i32
    return %c0_i32, %c0_i32_0 : i32, i32
  }
  func.func @transform_6(%arg0: i32) -> (i32, i32) {
    %c0_i32 = arith.constant 0 : i32
    %c0_i32_0 = arith.constant 0 : i32
    %c0_i32_1 = arith.constant 0 : i32
    return %c0_i32, %c0_i32_0 : i32, i32
  }
  func.func @transform_7(%arg0: i32) -> (i32, i32) {
    %c0_i32 = arith.constant 0 : i32
    %c0_i32_0 = arith.constant 0 : i32
    %c0_i32_1 = arith.constant 0 : i32
    return %c0_i32, %c0_i32_0 : i32, i32
  }
  func.func @transform_8(%arg0: i32) -> (i32, i32) {
    %c0_i32 = arith.constant 0 : i32
    %c0_i32_0 = arith.constant 0 : i32
    %c0_i32_1 = arith.constant 0 : i32
    return %c0_i32, %c0_i32_0 : i32, i32
  }
  func.func @transform_9(%arg0: i32) -> (i32, i32) {
    %c0_i32 = arith.constant 0 : i32
    %c0_i32_0 = arith.constant 0 : i32
    return %arg0, %c0_i32 : i32, i32
  }
}

</mosaic_0001>

<bundles_post_ra>
// kernel: tpu_custom_call.1
= control target key start
LH: loop header
LB: loop body
LE: loop exit
PB: predicated region body
PF: predicated region fallthrough
CT: control target
= control target key end

     0   :  { %s1300_s30 = smov 0   ;;  %s1460_s0 = inlined_call_operand.vmem [shape: f32[512,32], index: 0, kind: input, shape index: {}]   ;;  %s1461_s1 = inlined_call_operand.vmem [shape: f32[32,64], index: 1, kind: input, shape index: {}]   ;;  %s1462_s2 = inlined_call_operand.vmem [shape: f32[1,64], index: 2, kind: input, shape index: {}]   ;;  %s1463_s3 = inlined_call_operand.vmem [shape: f32[64,64], index: 3, kind: input, shape index: {}]   ;;  %s1464_s4 = inlined_call_operand.vmem [shape: f32[1,64], index: 4, kind: input, shape index: {}]   ;;  %s1465_s5 = inlined_call_operand.vmem [shape: f32[64,64], index: 5, kind: input, shape index: {}]   ;;  %s1466_s6 = inlined_call_operand.vmem [shape: f32[1,64], index: 6, kind: input, shape index: {}]   ;;  %s1467_s7 = inlined_call_operand.vmem [shape: f32[64,16], index: 7, kind: input, shape index: {}]   ;;  %s1468_s8 = inlined_call_operand.vmem [shape: f32[1,16], index: 8, kind: input, shape index: {}]   ;;  %s1469_s9 = inlined_call_operand.vmem [shape: f32[512,16], index: 9, kind: output, shape index: {}]  }
   0x1 LB: > { %s1007_s10 = sadd.s32 4294967295, %s1248_s30   ;;  %p1011_p0 = scmp.ge.s32.totalorder %s1248_s30, 1  ;;  %s1248_s30 = sphi %s1300_s30, %s19_s30  }
   0x2   : > { %p288_p1 = scmp.lt.s32.totalorder %s1248_s30, 9 }
   0x4   : > { %p289_p2 = pnand %p1011_p0, %p288_p1 }
   0x5   : > { %s1012_s15 = sshll.u32 (!%p289_p2), %s1007_s10, 3 }
   0x6   : > { %292 = sbr.rel (%p289_p2) target bundleno = 830 (0x33e), region = 56  ;;  %p325_p3 = scmp.lt.s32.totalorder (!%p289_p2), %s1012_s15, 63 }
   0xb   : > { %v347_v0 = vld [vmem:[%s1461_s1 + $0x18] sm:$0xff]  ;;  %v346_v1 = vld [vmem:[%s1461_s1 + $0x10] sm:$0xff]  ;;  %v345_v4 = vld [vmem:[%s1461_s1 + $0x8] sm:$0xff]  ;;  %s1471_s15 = smov (!%p325_p3, %s1012_s15), 63  ;;  %vm355_vm0 = vcmask 261120   ;;  %vm508_vm1 = vcmask 523264  }
   0xc   : > { %1114 = vmatprep.subr.mxu0 %v347_v0  ;;  %v500_v2 = vld [vmem:[%s1463_s3 + $0x38] sm:$0xff]  ;;  %v499_v3 = vld [vmem:[%s1463_s3 + $0x30] sm:$0xff]  ;;  %v498_v5 = vld [vmem:[%s1463_s3 + $0x28] sm:$0xff]  ;;  %s1013_s26 = sshll.u32 %s1471_s15, 3  ;;  %vm942_vm2 = vcmask 130048  }
   0xd   : > { %1115 = vmatpush3.msra.mxu0 %v347_v0  ;;  %1134 = vmatprep.subr.mxu1 %v500_v2  ;;  %v344_v6 = vld [vmem:[%s1461_s1] sm:$0xff]  ;;  %s328_s29 = scalar_lea.vmem %s1460_s0, %s1013_s26  ;;  %v496_v16 = vld [vmem:[%s1463_s3 + $0x18] sm:$0xff]  ;;  %v495_v17 = vld [vmem:[%s1463_s3 + $0x10] sm:$0xff]  ;;  %s334_s28 = scalar_lea.vmem %s1469_s9, %s1013_s26 }
   0xe   : > { %1116 = vmatprep.subr.mxu0 %v346_v1  ;;  %1135 = vmatpush3.msra.mxu1 %v500_v2  ;;  %v497_v7 = vld [vmem:[%s1463_s3 + $0x20] sm:$0xff]  ;;  %v337_v9 = vld [vmem:[%s328_s29 + $0x8] sm:$0xff]  ;;  %v338_v10 = vld [vmem:[%s328_s29 + $0x10] sm:$0xff] }
   0xf   : > { %1117 = vmatpush3.msra.mxu0 %v346_v1  ;;  %1136 = vmatprep.subr.mxu1 %v499_v3  ;;  %v336_v8 = vld [vmem:[%s328_s29] sm:$0xff]  ;;  %v339_v11 = vld [vmem:[%s328_s29 + $0x18] sm:$0xff]  ;;  %v341_v13 = vld [vmem:[%s328_s29 + $0x28] sm:$0xff] }
  0x10   : > { %1118 = vmatprep.subr.mxu0 %v345_v4  ;;  %1137 = vmatpush3.msra.mxu1 %v499_v3  ;;  %v340_v12 = vld [vmem:[%s328_s29 + $0x20] sm:$0xff]  ;;  %v342_v14 = vld [vmem:[%s328_s29 + $0x30] sm:$0xff]  ;;  %v343_v15 = vld [vmem:[%s328_s29 + $0x38] sm:$0xff] }
  0x11   : > { %1119 = vmatpush3.msra.mxu0 %v345_v4  ;;  %1138 = vmatprep.subr.mxu1 %v498_v5  ;;  %v494_v18 = vld [vmem:[%s1463_s3 + $0x8] sm:$0xff]  ;;  %v493_v19 = vld [vmem:[%s1463_s3] sm:$0xff]  ;;  %v653_v20 = vld [vmem:[%s1465_s5 + $0x38] sm:$0xff] }
  0x12   : > { %1120 = vmatprep.subr.mxu0 %v344_v6  ;;  %1139 = vmatpush3.msra.mxu1 %v498_v5  ;;  %v652_v21 = vld [vmem:[%s1465_s5 + $0x30] sm:$0xff]  ;;  %v651_v22 = vld [vmem:[%s1465_s5 + $0x28] sm:$0xff]  ;;  %v650_v23 = vld [vmem:[%s1465_s5 + $0x20] sm:$0xff] }
  0x13   : > { %1121 = vmatpush3.msra.mxu0 %v344_v6  ;;  %1122 = vmatprep.mubr.msk.f32.mxu0 %vm355_vm0, %v336_v8  ;;  %v649_v24 = vld [vmem:[%s1465_s5 + $0x18] sm:$0xff]  ;;  %v1016_v25 = vld [vmem:[%s1462_s2] ss:$0 sm:$0xff]  ;;  %v648_v50 = vld [vmem:[%s1465_s5 + $0x10] sm:$0xff] }
  0x14   : > { %1123 = vmatmul.mubr.msk.f32.vlgmr.msra.gmra.mxu0 %vm355_vm0, %v337_v9  ;;  %1140 = vmatprep.subr.mxu1 %v497_v7  ;;  %v647_v51 = vld [vmem:[%s1465_s5 + $0x8] sm:$0xff]  ;;  %v646_v52 = vld [vmem:[%s1465_s5] sm:$0xff]  ;;  %v805_v53 = vld [vmem:[%s1467_s7 + $0x38] sm:$0xff] }
  0x15   : > { %1125 = vmatprep.mubr.msk.f32.mxu0 %vm355_vm0, %v338_v10  ;;  %1141 = vmatpush3.msra.mxu1 %v497_v7  ;;  %v804_v54 = vld [vmem:[%s1467_s7 + $0x30] sm:$0xff]  ;;  %v803_v55 = vld [vmem:[%s1467_s7 + $0x28] sm:$0xff]  ;;  %v802_v56 = vld [vmem:[%s1467_s7 + $0x20] sm:$0xff] }
  0x16   : > { %1142 = vmatprep.subr.mxu1 %v496_v16  ;;  %1162 = vmatprep.subr.mxu0 %v653_v20  ;;  %v1025_v57 = vld [vmem:[%s1464_s4] ss:$0 sm:$0xff] }
  0x17   : > { %1143 = vmatpush3.msra.mxu1 %v496_v16  ;;  %1163 = vmatpush3.msra.mxu0 %v653_v20  ;;  %v799_v20 = vld [vmem:[%s1467_s7 + $0x8] sm:$0xff] }
  0x18   : > { %1126 = vmatmul.mubr.msk.f32.gmra.mxu0 %vm355_vm0, %v339_v11  ;;  %1144 = vmatprep.subr.mxu1 %v495_v17 }
  0x19   : > { %1128 = vmatprep.mubr.msk.f32.mxu0 %vm355_vm0, %v340_v12  ;;  %1145 = vmatpush3.msra.mxu1 %v495_v17 }
  0x1a   : > { %1146 = vmatprep.subr.mxu1 %v494_v18  ;;  %1164 = vmatprep.subr.mxu0 %v652_v21 }
  0x1b   : > { %1147 = vmatpush3.msra.mxu1 %v494_v18  ;;  %1165 = vmatpush3.msra.mxu0 %v652_v21  ;;  %v801_v18 = vld [vmem:[%s1467_s7 + $0x18] sm:$0xff]  ;;  %v798_v21 = vld [vmem:[%s1467_s7] sm:$0xff] }
  0x1c   : > { %1129 = vmatmul.mubr.msk.f32.gmra.mxu0 %vm355_vm0, %v341_v13  ;;  %1148 = vmatprep.subr.mxu1 %v493_v19 }
  0x1d   : > { %1131 = vmatprep.mubr.msk.f32.mxu0 %vm355_vm0, %v342_v14  ;;  %1149 = vmatpush3.msra.mxu1 %v493_v19  ;;  %v800_v19 = vld [vmem:[%s1467_s7 + $0x10] sm:$0xff] }
  0x1e   : > { %1166 = vmatprep.subr.mxu0 %v651_v22  ;;  %1218 = vmatprep.subr.mxu1 %v805_v53 }
  0x1f   : > { %1167 = vmatpush3.msra.mxu0 %v651_v22  ;;  %v1034_v22 = vld [vmem:[%s1466_s6] ss:$0 sm:$0xff] }
  0x20   : > { %1132 = vmatmul.mubr.msk.f32.gmra.mxu0 %vm355_vm0, %v343_v15  ;;  %1168 = vmatprep.subr.mxu0 %v650_v23 }
  0x21   : > { %1169 = vmatpush3.msra.mxu0 %v650_v23 }
  0x22   : > { %1170 = vmatprep.subr.mxu0 %v649_v24 }
  0x23   : > { %1171 = vmatpush3.msra.mxu0 %v649_v24 }
  0x24   : > { %1172 = vmatprep.subr.mxu0 %v648_v50 }
  0x25   : > { %1173 = vmatpush3.msra.mxu0 %v648_v50 }
  0x26   : > { %1174 = vmatprep.subr.mxu0 %v647_v51 }
  0x27   : > { %1175 = vmatpush3.msra.mxu0 %v647_v51 }
  0x28   : > { %1176 = vmatprep.subr.mxu0 %v646_v52 }
  0x29   : > { %1177 = vmatpush3.msra.mxu0 %v646_v52 }
  0x2a   : > { %1190 = vmatprep.subr.mxu0 %v805_v53 }
  0xd4   : > { %v1124_v26 = vpop.f32.mrf.mxu0 }
  0xd5   : > { %v452_v27 = vadd.f32 %v1124_v26, %v1016_v25 }
  0xd6   : > { %v446_v28 = vpop.f32.mrf.mxu0 }
  0xd7   : > { %v447_v29 = vadd.f32 %v1016_v25, %v446_v28  ;;  %v486_v32 = vmax.f32 %v452_v27, 0.0 }
  0xd8   : > { %v1127_v30 = vpop.f32.mrf.mxu0 }
  0xd9   : > { %v485_v31 = vmax.f32 %v447_v29, 0.0  ;;  %v462_v33 = vadd.f32 %v1127_v30, %v1016_v25 }
  0xda   : > { %v456_v34 = vpop.f32.mrf.mxu0 }
  0xdb   : > { %v457_v35 = vadd.f32 %v1016_v25, %v456_v34  ;;  %1150 = vmatprep.mubr.msk.f32.mxu1 %vm508_vm1, %v485_v31  ;;  %v488_v38 = vmax.f32 %v462_v33, 0.0 }
  0xdc   : > { %v1130_v36 = vpop.f32.mrf.mxu0  ;;  %1151 = vmatmul.mubr.msk.f32.vlgmr.msra.gmra.mxu1 %vm508_vm1, %v486_v32 }
  0xdd   : > { %v487_v37 = vmax.f32 %v457_v35, 0.0  ;;  %v472_v39 = vadd.f32 %v1130_v36, %v1016_v25  ;;  %1226 = vmatpush3.msra.mxu1 %v805_v53 }
  0xde   : > { %v466_v40 = vpop.f32.mrf.mxu0  ;;  %1219 = vmatprep.subr.mxu1 %v804_v54 }
  0xdf   : > { %v467_v41 = vadd.f32 %v1016_v25, %v466_v40  ;;  %1153 = vmatprep.mubr.msk.f32.mxu1 %vm508_vm1, %v487_v37  ;;  %v490_v44 = vmax.f32 %v472_v39, 0.0  ;;  %1227 = vmatpush3.msra.mxu1 %v804_v54 }
  0xe0   : > { %v1133_v42 = vpop.f32.mrf.mxu0  ;;  %1154 = vmatmul.mubr.msk.f32.gmra.mxu1 %vm508_vm1, %v488_v38  ;;  %1220 = vmatprep.subr.mxu1 %v803_v55 }
  0xe1   : > { %v489_v43 = vmax.f32 %v467_v41, 0.0  ;;  %v482_v45 = vadd.f32 %v1133_v42, %v1016_v25  ;;  %1228 = vmatpush3.msra.mxu1 %v803_v55 }
  0xe2   : > { %v476_v46 = vpop.f32.mrf.mxu0  ;;  %1221 = vmatprep.subr.mxu1 %v802_v56 }
  0xe3   : > { %v477_v47 = vadd.f32 %v1016_v25, %v476_v46  ;;  %1156 = vmatprep.mubr.msk.f32.mxu1 %vm508_vm1, %v489_v43  ;;  %v492_v49 = vmax.f32 %v482_v45, 0.0  ;;  %1229 = vmatpush3.msra.mxu1 %v802_v56 }
  0xe4   : > { %1157 = vmatmul.mubr.msk.f32.gmra.mxu1 %vm508_vm1, %v490_v44  ;;  %1222 = vmatprep.subr.mxu1 %v801_v18 }
  0xe5   : > { %v491_v48 = vmax.f32 %v477_v47, 0.0  ;;  %1230 = vmatpush3.msra.mxu1 %v801_v18  ;;  %v1043_v47 = vld [vmem:[%s1468_s8] ss:$0 sm:$0xff] }
  0xe6   : > { %1223 = vmatprep.subr.mxu1 %v800_v19 }
  0xe7   : > { %1159 = vmatprep.mubr.msk.f32.mxu1 %vm508_vm1, %v491_v48  ;;  %1231 = vmatpush3.msra.mxu1 %v800_v19 }
  0xe8   : > { %1160 = vmatmul.mubr.msk.f32.gmra.mxu1 %vm508_vm1, %v492_v49  ;;  %1224 = vmatprep.subr.mxu1 %v799_v20 }
  0xe9   : > { %1232 = vmatpush3.msra.mxu1 %v799_v20 }
  0xea   : > { %1225 = vmatprep.subr.mxu1 %v798_v21 }
  0xeb   : > { %1233 = vmatpush3.msra.mxu1 %v798_v21 }
 0x19c   : > { %v1152_v58 = vpop.f32.mrf.mxu1 }
 0x19d   : > { %v605_v59 = vadd.f32 %v1152_v58, %v1025_v57 }
 0x19e   : > { %v599_v60 = vpop.f32.mrf.mxu1 }
 0x19f   : > { %v600_v61 = vadd.f32 %v1025_v57, %v599_v60  ;;  %v639_v0 = vmax.f32 %v605_v59, 0.0 }
 0x1a0   : > { %v1155_v62 = vpop.f32.mrf.mxu1 }
 0x1a1   : > { %v638_v63 = vmax.f32 %v600_v61, 0.0  ;;  %v615_v1 = vadd.f32 %v1155_v62, %v1025_v57 }
 0x1a2   : > { %v609_v2 = vpop.f32.mrf.mxu1 }
 0x1a3   : > { %v610_v3 = vadd.f32 %v1025_v57, %v609_v2  ;;  %1178 = vmatprep.mubr.msk.f32.mxu0 %vm508_vm1, %v638_v63  ;;  %v641_v6 = vmax.f32 %v615_v1, 0.0 }
 0x1a4   : > { %v1158_v4 = vpop.f32.mrf.mxu1  ;;  %1179 = vmatmul.mubr.msk.f32.vlgmr.msra.gmra.mxu0 %vm508_vm1, %v639_v0 }
 0x1a5   : > { %v640_v5 = vmax.f32 %v610_v3, 0.0  ;;  %1191 = vmatpush3.msra.mxu0 %v805_v53  ;;  %v625_v7 = vadd.f32 %v1158_v4, %v1025_v57 }
 0x1a6   : > { %v619_v8 = vpop.f32.mrf.mxu1  ;;  %1192 = vmatprep.subr.mxu0 %v804_v54 }
 0x1a7   : > { %v620_v9 = vadd.f32 %v1025_v57, %v619_v8  ;;  %1181 = vmatprep.mubr.msk.f32.mxu0 %vm508_vm1, %v640_v5  ;;  %1193 = vmatpush3.msra.mxu0 %v804_v54  ;;  %v643_v12 = vmax.f32 %v625_v7, 0.0 }
 0x1a8   : > { %v1161_v10 = vpop.f32.mrf.mxu1  ;;  %1182 = vmatmul.mubr.msk.f32.gmra.mxu0 %vm508_vm1, %v641_v6  ;;  %1194 = vmatprep.subr.mxu0 %v803_v55 }
 0x1a9   : > { %v642_v11 = vmax.f32 %v620_v9, 0.0  ;;  %1195 = vmatpush3.msra.mxu0 %v803_v55  ;;  %v635_v13 = vadd.f32 %v1161_v10, %v1025_v57 }
 0x1aa   : > { %v629_v14 = vpop.f32.mrf.mxu1  ;;  %1196 = vmatprep.subr.mxu0 %v802_v56 }
 0x1ab   : > { %v630_v15 = vadd.f32 %v1025_v57, %v629_v14  ;;  %1184 = vmatprep.mubr.msk.f32.mxu0 %vm508_vm1, %v642_v11  ;;  %1197 = vmatpush3.msra.mxu0 %v802_v56  ;;  %v645_v17 = vmax.f32 %v635_v13, 0.0 }
 0x1ac   : > { %1185 = vmatmul.mubr.msk.f32.gmra.mxu0 %vm508_vm1, %v643_v12  ;;  %1198 = vmatprep.subr.mxu0 %v801_v18 }
 0x1ad   : > { %v644_v16 = vmax.f32 %v630_v15, 0.0  ;;  %1199 = vmatpush3.msra.mxu0 %v801_v18 }
 0x1ae   : > { %1200 = vmatprep.subr.mxu0 %v800_v19 }
 0x1af   : > { %1187 = vmatprep.mubr.msk.f32.mxu0 %vm508_vm1, %v644_v16  ;;  %1201 = vmatpush3.msra.mxu0 %v800_v19 }
 0x1b0   : > { %1188 = vmatmul.mubr.msk.f32.gmra.mxu0 %vm508_vm1, %v645_v17  ;;  %1202 = vmatprep.subr.mxu0 %v799_v20 }
 0x1b1   : > { %1203 = vmatpush3.msra.mxu0 %v799_v20 }
 0x1b2   : > { %1204 = vmatprep.subr.mxu0 %v798_v21 }
 0x1b3   : > { %1205 = vmatpush3.msra.mxu0 %v798_v21 }
 0x264   : > { %v1180_v23 = vpop.f32.mrf.mxu0 }
 0x265   : > { %v757_v24 = vadd.f32 %v1180_v23, %v1034_v22 }
 0x266   : > { %v751_v25 = vpop.f32.mrf.mxu0 }
 0x267   : > { %v752_v26 = vadd.f32 %v1034_v22, %v751_v25  ;;  %v791_v29 = vmax.f32 %v757_v24, 0.0 }
 0x268   : > { %v1183_v27 = vpop.f32.mrf.mxu0 }
 0x269   : > { %v790_v28 = vmax.f32 %v752_v26, 0.0  ;;  %v767_v30 = vadd.f32 %v1183_v27, %v1034_v22 }
 0x26a   : > { %v761_v31 = vpop.f32.mrf.mxu0 }
 0x26b   : > { %v762_v32 = vadd.f32 %v1034_v22, %v761_v31  ;;  %1206 = vmatprep.mubr.msk.f32.mxu0 %vm508_vm1, %v790_v28  ;;  %v793_v35 = vmax.f32 %v767_v30, 0.0 }
 0x26c   : > { %v1186_v33 = vpop.f32.mrf.mxu0  ;;  %1207 = vmatmul.mubr.msk.f32.vlgmr.msra.gmra.mxu0 %vm508_vm1, %v791_v29 }
 0x26d   : > { %v792_v34 = vmax.f32 %v762_v32, 0.0  ;;  %v777_v36 = vadd.f32 %v1186_v33, %v1034_v22 }
 0x26e   : > { %v771_v37 = vpop.f32.mrf.mxu0 }
 0x26f   : > { %v772_v38 = vadd.f32 %v1034_v22, %v771_v37  ;;  %1209 = vmatprep.mubr.msk.f32.mxu1 %vm508_vm1, %v792_v34  ;;  %v795_v41 = vmax.f32 %v777_v36, 0.0 }
 0x270   : > { %v1189_v39 = vpop.f32.mrf.mxu0  ;;  %1210 = vmatmul.mubr.msk.f32.vlgmr.msra.gmra.mxu1 %vm508_vm1, %v793_v35 }
 0x271   : > { %v794_v40 = vmax.f32 %v772_v38, 0.0  ;;  %v787_v42 = vadd.f32 %v1189_v39, %v1034_v22 }
 0x272   : > { %v781_v43 = vpop.f32.mrf.mxu0 }
 0x273   : > { %v782_v44 = vadd.f32 %v1034_v22, %v781_v43  ;;  %1212 = vmatprep.mubr.msk.f32.mxu1 %vm508_vm1, %v794_v40  ;;  %v797_v46 = vmax.f32 %v787_v42, 0.0 }
 0x274   : > { %1213 = vmatmul.mubr.msk.f32.gmra.mxu1 %vm508_vm1, %v795_v41 }
 0x275   : > { %v796_v45 = vmax.f32 %v782_v44, 0.0 }
 0x277   : > { %1215 = vmatprep.mubr.msk.f32.mxu1 %vm508_vm1, %v796_v45 }
 0x278   : > { %1216 = vmatmul.mubr.msk.f32.gmra.mxu1 %vm508_vm1, %v797_v46 }
 0x32c   : > { %v1208_v48 = vpop.f32.mrf.mxu0 }
 0x32d   : > { %v909_v49 = vadd.f32 %v1208_v48, %v1043_v47 }
 0x32e   : > { %v903_v50 = vpop.f32.mrf.mxu0 }
 0x32f   : > { %944 = vst.msk [vmem:[%s334_s28 + $0x8] sm:$0xff] %vm942_vm2, %v909_v49  ;;  %v904_v51 = vadd.f32 %v1043_v47, %v903_v50 }
 0x330   : > { %v1211_v52 = vpop.f32.mrf.mxu1 }
 0x331   : > { %943 = vst.msk [vmem:[%s334_s28] sm:$0xff] %vm942_vm2, %v904_v51  ;;  %v919_v53 = vadd.f32 %v1211_v52, %v1043_v47 }
 0x332   : > { %v913_v54 = vpop.f32.mrf.mxu1 }
 0x333   : > { %946 = vst.msk [vmem:[%s334_s28 + $0x18] sm:$0xff] %vm942_vm2, %v919_v53  ;;  %v914_v55 = vadd.f32 %v1043_v47, %v913_v54 }
 0x334   : > { %v1214_v56 = vpop.f32.mrf.mxu1 }
 0x335   : > { %945 = vst.msk [vmem:[%s334_s28 + $0x10] sm:$0xff] %vm942_vm2, %v914_v55  ;;  %v929_v57 = vadd.f32 %v1214_v56, %v1043_v47 }
 0x336   : > { %v923_v58 = vpop.f32.mrf.mxu1 }
 0x337   : > { %948 = vst.msk [vmem:[%s334_s28 + $0x28] sm:$0xff] %vm942_vm2, %v929_v57  ;;  %v924_v59 = vadd.f32 %v1043_v47, %v923_v58 }
 0x338   : > { %v1217_v60 = vpop.f32.mrf.mxu1 }
 0x339   : > { %947 = vst.msk [vmem:[%s334_s28 + $0x20] sm:$0xff] %vm942_vm2, %v924_v59  ;;  %v939_v61 = vadd.f32 %v1217_v60, %v1043_v47 }
 0x33a   : > { %v933_v62 = vpop.f32.mrf.mxu1 }
 0x33b   : > { %950 = vst.msk [vmem:[%s334_s28 + $0x38] sm:$0xff] %vm942_vm2, %v939_v61  ;;  %v934_v63 = vadd.f32 %v1043_v47, %v933_v62 }
 0x33d   : > { %949 = vst.msk [vmem:[%s334_s28 + $0x30] sm:$0xff] %vm942_vm2, %v934_v63 }
 0x33e PF: > { %s19_s30 = sadd.s32 1, %s1248_s30  }
 0x33f   : > { %p16_p4 = scmp.ge.s32.totalorder %s19_s30, 10  }
 0x341   :  { %18 = sbr.rel (!%p16_p4) target bundleno = 1 (0x1), region = 86 }

</bundles_post_ra>
